<compile_context>
chip_gen: v7x
topology: tpu7x:2x2x1
jax: 0.10.0
libtpu: 0.0.40
codegen_flags: <defaults>
</compile_context>

<pallas_src>
import jax
import jax.numpy as jnp
from jax.experimental import pallas as pl
from jax.experimental.pallas import tpu as pltpu


# ----------------------------- Pallas kernel ------------------------------ #
def _fused_emb_kernel(h_ref, xv_ref,
                      wh1_ref, bh1_ref, wh2_ref, bh2_ref,
                      wx1_ref, bx1_ref, wx2_ref, bx2_ref,
                      wv1_ref, bv1_ref, wv2_ref, bv2_ref,
                      wf1h_ref, wf1x_ref, wf1v_ref, bf1_ref,
                      wf2_ref, bf2_ref,
                      o_ref, h_cache):
    f32 = jnp.float32

    def silu(z):
        return z * jax.nn.sigmoid(z)

    # ---- H path: channel-invariant -> compute only on the first channel step
    #      of each row tile and cache in VMEM scratch (persists across steps).
    @pl.when(pl.program_id(1) == 0)
    def _():
        hh = jnp.dot(h_ref[...], wh1_ref[...],
                     preferred_element_type=f32) + bh1_ref[...]
        h_cache[...] = jnp.dot(silu(hh), wh2_ref[...],
                               preferred_element_type=f32) + bh2_ref[...]

    H = h_cache[...]

    xv = xv_ref[0]                               # (tile_m, 6) = [x | v]

    # ---- X path: K=3 contraction as VPU broadcast-FMAs (MXU nearly idle) ----
    wx1 = wx1_ref[...]
    hx = (xv[:, 0:1] * wx1[0:1, :]
          + xv[:, 1:2] * wx1[1:2, :]
          + xv[:, 2:3] * wx1[2:3, :]) + bx1_ref[...]
    X = jnp.dot(silu(hx), wx2_ref[...], preferred_element_type=f32) + bx2_ref[...]

    # ---- V path: same VPU formulation ----
    wv1 = wv1_ref[...]
    hv = (xv[:, 3:4] * wv1[0:1, :]
          + xv[:, 4:5] * wv1[1:2, :]
          + xv[:, 5:6] * wv1[2:3, :]) + bv1_ref[...]
    V = jnp.dot(silu(hv), wv2_ref[...], preferred_element_type=f32) + bv2_ref[...]

    # ---- F path: W_F1 split into H/X/V blocks -> no [tile_m, 3*dim] concat --
    f1 = (jnp.dot(H, wf1h_ref[...], preferred_element_type=f32)
          + jnp.dot(X, wf1x_ref[...], preferred_element_type=f32)
          + jnp.dot(V, wf1v_ref[...], preferred_element_type=f32)
          + bf1_ref[...])
    out = jnp.dot(silu(f1), wf2_ref[...], preferred_element_type=f32) + bf2_ref[...]
    o_ref[0] = out.astype(o_ref.dtype)


def _pick_tile_m(m, target=2048):
    """Row tile: multiple of 8, large enough to amortize ~600-cycle per-step
    overhead, but small enough that the 'parallel' row axis has >=2 steps
    (v7x has two TensorCores)."""
    m8 = -(-m // 8) * 8                       # round up to sublane multiple
    if m8 <= 2 * target:
        half = -(-m8 // 16) * 8               # ~half of m8, rounded up to 8
        return max(half, 8)
    return target


def fused_embedding_mlp(h, xv, params, *, dim, out_dim, tile_m=None):
    """Fused H/X/V/F MLP pipeline.

    h:  [BN, size_xh+k]   (channel-shared; broadcast over C via the index_map)
    xv: [C, BN, 6]        (x and v concatenated on the last axis)
    returns: [C, BN, out_dim]
    """
    BN, din_h = h.shape
    C = xv.shape[0]
    assert xv.shape == (C, BN, 6), xv.shape

    wH1, bH1, wH2, bH2 = params["H"]
    wX1, bX1, wX2, bX2 = params["X"]
    wV1, bV1, wV2, bV2 = params["V"]
    wF1, bF1, wF2, bF2 = params["F"]

    # Split W_F1 ([3*dim, dim]) into its H/X/V blocks (accumulated in-kernel).
    wF1h, wF1x, wF1v = wF1[:dim], wF1[dim:2 * dim], wF1[2 * dim:3 * dim]

    if tile_m is None:
        tile_m = _pick_tile_m(BN)
    m_pad = pl.cdiv(BN, tile_m) * tile_m
    if m_pad != BN:
        h = jnp.pad(h, ((0, m_pad - BN), (0, 0)))
        xv = jnp.pad(xv, ((0, 0), (0, m_pad - BN), (0, 0)))
    num_row_tiles = m_pad // tile_m

    b2 = lambda b: b.reshape(1, -1)
    weights = [wH1, b2(bH1), wH2, b2(bH2),
               wX1, b2(bX1), wX2, b2(bX2),
               wV1, b2(bV1), wV2, b2(bV2),
               wF1h, wF1x, wF1v, b2(bF1),
               wF2, b2(bF2)]

    def wspec(a):
        # Full-array block, same (0, 0) block every step -> weights stay
        # resident in VMEM across the whole grid.
        return pl.BlockSpec(a.shape, lambda i, c: (0, 0))

    out = pl.pallas_call(
        _fused_emb_kernel,
        out_shape=jax.ShapeDtypeStruct((C, m_pad, out_dim), xv.dtype),
        grid_spec=pltpu.PrefetchScalarGridSpec(
            num_scalar_prefetch=0,
            grid=(num_row_tiles, C),            # channel axis innermost
            in_specs=[
                # h is channel-shared: index_map ignores c -> broadcast done
                # by the BlockSpec, never materialized in HBM.
                pl.BlockSpec((tile_m, din_h), lambda i, c: (i, 0)),
                pl.BlockSpec((1, tile_m, 6), lambda i, c: (c, i, 0)),
            ] + [wspec(w) for w in weights],
            out_specs=pl.BlockSpec((1, tile_m, out_dim), lambda i, c: (c, i, 0)),
            scratch_shapes=[pltpu.VMEM((tile_m, dim), jnp.float32)],  # H cache
        ),
        compiler_params=pltpu.CompilerParams(
            dimension_semantics=("parallel", "arbitrary")),
    )(h, xv, *weights)

    if m_pad != BN:
        out = out[:, :BN, :]
    return out


# ------------------------------ JAX glue ----------------------------------- #
def eig_abstract(e, N, E, k):
    """eig(..., mod='abstract'): normalized Laplacian eigendecomposition
    (matches the PyTorch module: D^{-1/2} (D - A) D^{-1/2})."""
    idx0 = e[0][:E]
    idx1 = e[1][:E]
    adj = jnp.zeros((N, N), jnp.float32).at[idx0, idx1].set(1.0)
    degree = jnp.sum(adj, axis=-1)
    D = jnp.diag(degree)
    lap = D - adj
    d_inv_sqrt = jnp.diag(1.0 / jnp.sqrt(degree))   # inv(sqrt(D)) for diagonal D
    lap = d_inv_sqrt @ lap @ d_inv_sqrt
    val, vec = jnp.linalg.eigh(lap, UPLO='U', symmetrize_input=False)
    val = jnp.flip(val, axis=-1)[:k]
    vec = jnp.flip(vec, axis=-1)[:, :k]
    return val, vec


def embedding_forward(x, x_attr, e, e_attr, v, params, *, B, N, E, C, k, dim, out_dim):
    """
    x:      [C, B*N, 3]
    x_attr: [B, N, size_xh]
    e:      [2, E] int32
    e_attr: [B, E, 5]   (unused by the forward pass, kept for signature parity)
    v:      [C, B*N, 3]
    returns f_h: [C, B*N, out_dim]
    """
    del e_attr
    abs_val, abs_vec = eig_abstract(e, N, E, k)                 # [k], [N, k]
    abs_feat = (abs_val / abs_val.max())[None, :] * abs_vec     # [N, k]
    abs_feat = jnp.broadcast_to(abs_feat[None], (B, N, k))      # [B, N, k]

    h = jnp.concatenate([x_attr, abs_feat], axis=-1)            # [B, N, size_xh+k]
    h = h.reshape(B * N, -1)                                    # channel-shared
    xv = jnp.concatenate([x, v], axis=-1)                       # [C, B*N, 6]

    return fused_embedding_mlp(h, xv, params, dim=dim, out_dim=out_dim)


# ----------------------- pure-JAX reference (check) ------------------------ #
def _mlp2_ref(x, w1, b1, w2, b2):
    hp = jax.lax.Precision.HIGHEST
    h = jnp.dot(x, w1, precision=hp) + b1
    h = h * jax.nn.sigmoid(h)
    return jnp.dot(h, w2, precision=hp) + b2


def embedding_forward_ref(x, x_attr, e, e_attr, v, params, *, B, N, E, C, k, dim, out_dim):
    del e_attr
    abs_val, abs_vec = eig_abstract(e, N, E, k)
    abs_feat = (abs_val / abs_val.max())[None, :] * abs_vec
    abs_feat = jnp.broadcast_to(abs_feat[None], (B, N, k))
    h = jnp.concatenate([x_attr, abs_feat], axis=-1).reshape(B * N, -1)
    x_flat = x.reshape(C * B * N, 3)
    v_flat = v.reshape(C * B * N, 3)
    H = _mlp2_ref(h, *params["H"])
    X = _mlp2_ref(x_flat, *params["X"])
    V = _mlp2_ref(v_flat, *params["V"])
    Hc = jnp.broadcast_to(H[None], (C, B * N, dim)).reshape(C * B * N, dim)
    f_in = jnp.concatenate([Hc, X, V], axis=-1)
    f_h = _mlp2_ref(f_in, *params["F"])
    return f_h.reshape(C, B * N, out_dim)


# ------------------------- deterministic params ---------------------------- #
def init_linear(key, fan_in, fan_out):
    kw, kb = jax.random.split(key)
    bound = 1.0 / jnp.sqrt(jnp.float32(fan_in))
    w = jax.random.uniform(kw, (fan_in, fan_out), jnp.float32, -bound, bound)
    b = jax.random.uniform(kb, (fan_out,), jnp.float32, -bound, bound)
    return w, b


if __name__ == "__main__":
    # small, module-consistent shapes
    B, N, C = 2, 16, 2
    E = 2 * N          # 32 edges (ring, both directions)
    size_xh, k, dim, out_dim = 2, 4, 32, 8

    key = jax.random.PRNGKey(0)
    ks = jax.random.split(key, 12)

    # parameters (PyTorch nn.Linear-style uniform init, deterministic)
    wH1, bH1 = init_linear(ks[0], size_xh + k, dim)
    wH2, bH2 = init_linear(ks[1], dim, dim)
    wX1, bX1 = init_linear(ks[2], 3, dim)
    wX2, bX2 = init_linear(ks[3], dim, dim)
    wV1, bV1 = init_linear(ks[4], 3, dim)
    wV2, bV2 = init_linear(ks[5], dim, dim)
    wF1, bF1 = init_linear(ks[6], 3 * dim, dim)
    wF2, bF2 = init_linear(ks[7], dim, out_dim)
    params = {
        "H": (wH1, bH1, wH2, bH2),
        "X": (wX1, bX1, wX2, bX2),
        "V": (wV1, bV1, wV2, bV2),
        "F": (wF1, bF1, wF2, bF2),
    }

    # inputs
    x = jax.random.normal(ks[8], (C, B * N, 3), jnp.float32)
    v = jax.random.normal(ks[9], (C, B * N, 3), jnp.float32)
    x_attr = jax.random.normal(ks[10], (B, N, size_xh), jnp.float32)
    e_attr = jax.random.normal(ks[11], (B, E, 5), jnp.float32)

    # deterministic ring graph (both directions) -> every node has degree 2
    src = jnp.arange(N, dtype=jnp.int32)
    dst = (src + 1) % N
    e = jnp.stack([jnp.concatenate([src, dst]),
                   jnp.concatenate([dst, src])])                # [2, E]

    out = embedding_forward(
        x, x_attr, e, e_attr, v, params,
        B=B, N=N, E=E, C=C, k=k, dim=dim, out_dim=out_dim)
    out = jax.block_until_ready(out)
    assert out.shape == (C, B * N, out_dim), out.shape
    assert jnp.all(jnp.isfinite(out))

    ref = embedding_forward_ref(
        x, x_attr, e, e_attr, v, params,
        B=B, N=N, E=E, C=C, k=k, dim=dim, out_dim=out_dim)
    ref = jax.block_until_ready(ref)
    assert jnp.allclose(out, ref, rtol=1e-3, atol=1e-3), \
        float(jnp.max(jnp.abs(out - ref)))

    print("KERNEL_OK")
</pallas_src>

<mosaic_0001>
module attributes {stable_mosaic.version = 11 : i64} {
  func.func @_fused_emb_kernel(%arg0: i32, %arg1: i32, %arg2: memref<16x6xf32, #tpu.memory_space<vmem>>, %arg3: memref<1x16x6xf32, #tpu.memory_space<vmem>>, %arg4: memref<6x32xf32, #tpu.memory_space<vmem>>, %arg5: memref<1x32xf32, #tpu.memory_space<vmem>>, %arg6: memref<32x32xf32, #tpu.memory_space<vmem>>, %arg7: memref<1x32xf32, #tpu.memory_space<vmem>>, %arg8: memref<3x32xf32, #tpu.memory_space<vmem>>, %arg9: memref<1x32xf32, #tpu.memory_space<vmem>>, %arg10: memref<32x32xf32, #tpu.memory_space<vmem>>, %arg11: memref<1x32xf32, #tpu.memory_space<vmem>>, %arg12: memref<3x32xf32, #tpu.memory_space<vmem>>, %arg13: memref<1x32xf32, #tpu.memory_space<vmem>>, %arg14: memref<32x32xf32, #tpu.memory_space<vmem>>, %arg15: memref<1x32xf32, #tpu.memory_space<vmem>>, %arg16: memref<32x32xf32, #tpu.memory_space<vmem>>, %arg17: memref<32x32xf32, #tpu.memory_space<vmem>>, %arg18: memref<32x32xf32, #tpu.memory_space<vmem>>, %arg19: memref<1x32xf32, #tpu.memory_space<vmem>>, %arg20: memref<32x8xf32, #tpu.memory_space<vmem>>, %arg21: memref<1x8xf32, #tpu.memory_space<vmem>>, %arg22: memref<1x16x8xf32, #tpu.memory_space<vmem>>, %arg23: memref<16x32xf32, #tpu.memory_space<vmem>>) attributes {dimension_semantics = [#tpu.dimension_semantics<parallel>, #tpu.dimension_semantics<arbitrary>], iteration_bounds = array<i64: 2, 2>, scalar_prefetch = 0 : i64, scratch_operands = 1 : i64, tpu.core_type = #tpu.core_type<tc>, window_params = [{transform_indices = @transform_0, window_bounds = array<i64: 16, 6>}, {transform_indices = @transform_1, window_bounds = array<i64: 1, 16, 6>}, {pipeline_mode = #tpu.pipeline_mode<synchronous>, transform_indices = @transform_2, window_bounds = array<i64: 6, 32>}, {pipeline_mode = #tpu.pipeline_mode<synchronous>, transform_indices = @transform_3, window_bounds = array<i64: 1, 32>}, {pipeline_mode = #tpu.pipeline_mode<synchronous>, transform_indices = @transform_4, window_bounds = array<i64: 32, 32>}, {pipeline_mode = #tpu.pipeline_mode<synchronous>, transform_indices = @transform_5, window_bounds = array<i64: 1, 32>}, {pipeline_mode = #tpu.pipeline_mode<synchronous>, transform_indices = @transform_6, window_bounds = array<i64: 3, 32>}, {pipeline_mode = #tpu.pipeline_mode<synchronous>, transform_indices = @transform_7, window_bounds = array<i64: 1, 32>}, {pipeline_mode = #tpu.pipeline_mode<synchronous>, transform_indices = @transform_8, window_bounds = array<i64: 32, 32>}, {pipeline_mode = #tpu.pipeline_mode<synchronous>, transform_indices = @transform_9, window_bounds = array<i64: 1, 32>}, {pipeline_mode = #tpu.pipeline_mode<synchronous>, transform_indices = @transform_10, window_bounds = array<i64: 3, 32>}, {pipeline_mode = #tpu.pipeline_mode<synchronous>, transform_indices = @transform_11, window_bounds = array<i64: 1, 32>}, {pipeline_mode = #tpu.pipeline_mode<synchronous>, transform_indices = @transform_12, window_bounds = array<i64: 32, 32>}, {pipeline_mode = #tpu.pipeline_mode<synchronous>, transform_indices = @transform_13, window_bounds = array<i64: 1, 32>}, {pipeline_mode = #tpu.pipeline_mode<synchronous>, transform_indices = @transform_14, window_bounds = array<i64: 32, 32>}, {pipeline_mode = #tpu.pipeline_mode<synchronous>, transform_indices = @transform_15, window_bounds = array<i64: 32, 32>}, {pipeline_mode = #tpu.pipeline_mode<synchronous>, transform_indices = @transform_16, window_bounds = array<i64: 32, 32>}, {pipeline_mode = #tpu.pipeline_mode<synchronous>, transform_indices = @transform_17, window_bounds = array<i64: 1, 32>}, {pipeline_mode = #tpu.pipeline_mode<synchronous>, transform_indices = @transform_18, window_bounds = array<i64: 32, 8>}, {pipeline_mode = #tpu.pipeline_mode<synchronous>, transform_indices = @transform_19, window_bounds = array<i64: 1, 8>}, {transform_indices = @transform_20, window_bounds = array<i64: 1, 16, 8>}]} {
    %c0_i32 = arith.constant 0 : i32
    %0 = arith.cmpi eq, %arg1, %c0_i32 : i32
    %1 = arith.extui %0 : i1 to i32
    %c0_i32_0 = arith.constant 0 : i32
    %2 = arith.cmpi ne, %1, %c0_i32_0 : i32
    scf.if %2 {
      %c0_44 = arith.constant 0 : index
      %c0_45 = arith.constant 0 : index
      %95 = vector.load %arg2[%c0_44, %c0_45] : memref<16x6xf32, #tpu.memory_space<vmem>>, vector<16x6xf32>
      %c0_46 = arith.constant 0 : index
      %c0_47 = arith.constant 0 : index
      %96 = vector.load %arg4[%c0_46, %c0_47] : memref<6x32xf32, #tpu.memory_space<vmem>>, vector<6x32xf32>
      %cst_48 = arith.constant dense<0.000000e+00> : vector<16x32xf32>
      %97 = tpu.matmul %95, %96, %cst_48 {dimension_numbers = #tpu.dot_dimension_numbers<[1], [0], [0], [1], [0, 0, 1, 1], [], []>} : vector<16x6xf32>, vector<6x32xf32>, vector<16x32xf32> -> vector<16x32xf32>
      %c0_49 = arith.constant 0 : index
      %c0_50 = arith.constant 0 : index
      %98 = vector.load %arg5[%c0_49, %c0_50] : memref<1x32xf32, #tpu.memory_space<vmem>>, vector<1x32xf32>
      %99 = vector.broadcast %98 : vector<1x32xf32> to vector<16x32xf32>
      %100 = arith.addf %97, %99 : vector<16x32xf32>
      %101 = arith.negf %100 : vector<16x32xf32>
      %102 = math.exp %101 : vector<16x32xf32>
      %cst_51 = arith.constant 1.000000e+00 : f32
      %103 = vector.broadcast %cst_51 : f32 to vector<16x32xf32>
      %104 = arith.addf %103, %102 : vector<16x32xf32>
      %105 = arith.divf %103, %104 : vector<16x32xf32>
      %106 = arith.mulf %100, %105 : vector<16x32xf32>
      %c0_52 = arith.constant 0 : index
      %c0_53 = arith.constant 0 : index
      %107 = vector.load %arg6[%c0_52, %c0_53] : memref<32x32xf32, #tpu.memory_space<vmem>>, vector<32x32xf32>
      %cst_54 = arith.constant dense<0.000000e+00> : vector<16x32xf32>
      %108 = tpu.matmul %106, %107, %cst_54 {dimension_numbers = #tpu.dot_dimension_numbers<[1], [0], [0], [1], [0, 0, 1, 1], [], []>} : vector<16x32xf32>, vector<32x32xf32>, vector<16x32xf32> -> vector<16x32xf32>
      %c0_55 = arith.constant 0 : index
      %c0_56 = arith.constant 0 : index
      %109 = vector.load %arg7[%c0_55, %c0_56] : memref<1x32xf32, #tpu.memory_space<vmem>>, vector<1x32xf32>
      %110 = vector.broadcast %109 : vector<1x32xf32> to vector<16x32xf32>
      %111 = arith.addf %108, %110 : vector<16x32xf32>
      %c0_57 = arith.constant 0 : index
      %c0_58 = arith.constant 0 : index
      %112 = vector.load %arg23[%c0_57, %c0_58] : memref<16x32xf32, #tpu.memory_space<vmem>>, vector<16x32xf32>
      tpu.vector_store %arg23[%c0_57, %c0_58], %111 {strides = array<i32>} : memref<16x32xf32, #tpu.memory_space<vmem>>, vector<16x32xf32>,
    } else {
    }
    %c0 = arith.constant 0 : index
    %c0_1 = arith.constant 0 : index
    %3 = vector.load %arg23[%c0, %c0_1] : memref<16x32xf32, #tpu.memory_space<vmem>>, vector<16x32xf32>
    %c0_2 = arith.constant 0 : index
    %c0_3 = arith.constant 0 : index
    %c0_4 = arith.constant 0 : index
    %4 = vector.load %arg3[%c0_2, %c0_3, %c0_4] : memref<1x16x6xf32, #tpu.memory_space<vmem>>, vector<1x16x6xf32>
    %5 = vector.shape_cast %4 : vector<1x16x6xf32> to vector<16x6xf32>
    %c0_5 = arith.constant 0 : index
    %c0_6 = arith.constant 0 : index
    %6 = vector.load %arg8[%c0_5, %c0_6] : memref<3x32xf32, #tpu.memory_space<vmem>>, vector<3x32xf32>
    %7 = vector.extract_strided_slice %5 {offsets = [0, 0], sizes = [16, 1], strides = [1, 1]} : vector<16x6xf32> to vector<16x1xf32>
    %8 = vector.extract_strided_slice %6 {offsets = [0, 0], sizes = [1, 32], strides = [1, 1]} : vector<3x32xf32> to vector<1x32xf32>
    %9 = vector.broadcast %7 : vector<16x1xf32> to vector<16x32xf32>
    %10 = vector.broadcast %8 : vector<1x32xf32> to vector<16x32xf32>
    %11 = arith.mulf %9, %10 : vector<16x32xf32>
    %12 = vector.extract_strided_slice %5 {offsets = [0, 1], sizes = [16, 1], strides = [1, 1]} : vector<16x6xf32> to vector<16x1xf32>
    %13 = vector.extract_strided_slice %6 {offsets = [1, 0], sizes = [1, 32], strides = [1, 1]} : vector<3x32xf32> to vector<1x32xf32>
    %14 = vector.broadcast %12 : vector<16x1xf32> to vector<16x32xf32>
    %15 = vector.broadcast %13 : vector<1x32xf32> to vector<16x32xf32>
    %16 = arith.mulf %14, %15 : vector<16x32xf32>
    %17 = arith.addf %11, %16 : vector<16x32xf32>
    %18 = vector.extract_strided_slice %5 {offsets = [0, 2], sizes = [16, 1], strides = [1, 1]} : vector<16x6xf32> to vector<16x1xf32>
    %19 = vector.extract_strided_slice %6 {offsets = [2, 0], sizes = [1, 32], strides = [1, 1]} : vector<3x32xf32> to vector<1x32xf32>
    %20 = vector.broadcast %18 : vector<16x1xf32> to vector<16x32xf32>
    %21 = vector.broadcast %19 : vector<1x32xf32> to vector<16x32xf32>
    %22 = arith.mulf %20, %21 : vector<16x32xf32>
    %23 = arith.addf %17, %22 : vector<16x32xf32>
    %c0_7 = arith.constant 0 : index
    %c0_8 = arith.constant 0 : index
    %24 = vector.load %arg9[%c0_7, %c0_8] : memref<1x32xf32, #tpu.memory_space<vmem>>, vector<1x32xf32>
    %25 = vector.broadcast %24 : vector<1x32xf32> to vector<16x32xf32>
    %26 = arith.addf %23, %25 : vector<16x32xf32>
    %27 = arith.negf %26 : vector<16x32xf32>
    %28 = math.exp %27 : vector<16x32xf32>
    %cst = arith.constant 1.000000e+00 : f32
    %29 = vector.broadcast %cst : f32 to vector<16x32xf32>
    %30 = arith.addf %29, %28 : vector<16x32xf32>
    %31 = arith.divf %29, %30 : vector<16x32xf32>
    %32 = arith.mulf %26, %31 : vector<16x32xf32>
    %c0_9 = arith.constant 0 : index
    %c0_10 = arith.constant 0 : index
    %33 = vector.load %arg10[%c0_9, %c0_10] : memref<32x32xf32, #tpu.memory_space<vmem>>, vector<32x32xf32>
    %cst_11 = arith.constant dense<0.000000e+00> : vector<16x32xf32>
    %34 = tpu.matmul %32, %33, %cst_11 {dimension_numbers = #tpu.dot_dimension_numbers<[1], [0], [0], [1], [0, 0, 1, 1], [], []>} : vector<16x32xf32>, vector<32x32xf32>, vector<16x32xf32> -> vector<16x32xf32>
    %c0_12 = arith.constant 0 : index
    %c0_13 = arith.constant 0 : index
    %35 = vector.load %arg11[%c0_12, %c0_13] : memref<1x32xf32, #tpu.memory_space<vmem>>, vector<1x32xf32>
    %36 = vector.broadcast %35 : vector<1x32xf32> to vector<16x32xf32>
    %37 = arith.addf %34, %36 : vector<16x32xf32>
    %c0_14 = arith.constant 0 : index
    %c0_15 = arith.constant 0 : index
    %38 = vector.load %arg12[%c0_14, %c0_15] : memref<3x32xf32, #tpu.memory_space<vmem>>, vector<3x32xf32>
    %39 = vector.extract_strided_slice %5 {offsets = [0, 3], sizes = [16, 1], strides = [1, 1]} : vector<16x6xf32> to vector<16x1xf32>
    %40 = vector.extract_strided_slice %38 {offsets = [0, 0], sizes = [1, 32], strides = [1, 1]} : vector<3x32xf32> to vector<1x32xf32>
    %41 = vector.broadcast %39 : vector<16x1xf32> to vector<16x32xf32>
    %42 = vector.broadcast %40 : vector<1x32xf32> to vector<16x32xf32>
    %43 = arith.mulf %41, %42 : vector<16x32xf32>
    %44 = vector.extract_strided_slice %5 {offsets = [0, 4], sizes = [16, 1], strides = [1, 1]} : vector<16x6xf32> to vector<16x1xf32>
    %45 = vector.extract_strided_slice %38 {offsets = [1, 0], sizes = [1, 32], strides = [1, 1]} : vector<3x32xf32> to vector<1x32xf32>
    %46 = vector.broadcast %44 : vector<16x1xf32> to vector<16x32xf32>
    %47 = vector.broadcast %45 : vector<1x32xf32> to vector<16x32xf32>
    %48 = arith.mulf %46, %47 : vector<16x32xf32>
    %49 = arith.addf %43, %48 : vector<16x32xf32>
    %50 = vector.extract_strided_slice %5 {offsets = [0, 5], sizes = [16, 1], strides = [1, 1]} : vector<16x6xf32> to vector<16x1xf32>
    %51 = vector.extract_strided_slice %38 {offsets = [2, 0], sizes = [1, 32], strides = [1, 1]} : vector<3x32xf32> to vector<1x32xf32>
    %52 = vector.broadcast %50 : vector<16x1xf32> to vector<16x32xf32>
    %53 = vector.broadcast %51 : vector<1x32xf32> to vector<16x32xf32>
    %54 = arith.mulf %52, %53 : vector<16x32xf32>
    %55 = arith.addf %49, %54 : vector<16x32xf32>
    %c0_16 = arith.constant 0 : index
    %c0_17 = arith.constant 0 : index
    %56 = vector.load %arg13[%c0_16, %c0_17] : memref<1x32xf32, #tpu.memory_space<vmem>>, vector<1x32xf32>
    %57 = vector.broadcast %56 : vector<1x32xf32> to vector<16x32xf32>
    %58 = arith.addf %55, %57 : vector<16x32xf32>
    %59 = arith.negf %58 : vector<16x32xf32>
    %60 = math.exp %59 : vector<16x32xf32>
    %cst_18 = arith.constant 1.000000e+00 : f32
    %61 = vector.broadcast %cst_18 : f32 to vector<16x32xf32>
    %62 = arith.addf %61, %60 : vector<16x32xf32>
    %63 = arith.divf %61, %62 : vector<16x32xf32>
    %64 = arith.mulf %58, %63 : vector<16x32xf32>
    %c0_19 = arith.constant 0 : index
    %c0_20 = arith.constant 0 : index
    %65 = vector.load %arg14[%c0_19, %c0_20] : memref<32x32xf32, #tpu.memory_space<vmem>>, vector<32x32xf32>
    %cst_21 = arith.constant dense<0.000000e+00> : vector<16x32xf32>
    %66 = tpu.matmul %64, %65, %cst_21 {dimension_numbers = #tpu.dot_dimension_numbers<[1], [0], [0], [1], [0, 0, 1, 1], [], []>} : vector<16x32xf32>, vector<32x32xf32>, vector<16x32xf32> -> vector<16x32xf32>
    %c0_22 = arith.constant 0 : index
    %c0_23 = arith.constant 0 : index
    %67 = vector.load %arg15[%c0_22, %c0_23] : memref<1x32xf32, #tpu.memory_space<vmem>>, vector<1x32xf32>
    %68 = vector.broadcast %67 : vector<1x32xf32> to vector<16x32xf32>
    %69 = arith.addf %66, %68 : vector<16x32xf32>
    %c0_24 = arith.constant 0 : index
    %c0_25 = arith.constant 0 : index
    %70 = vector.load %arg16[%c0_24, %c0_25] : memref<32x32xf32, #tpu.memory_space<vmem>>, vector<32x32xf32>
    %cst_26 = arith.constant dense<0.000000e+00> : vector<16x32xf32>
    %71 = tpu.matmul %3, %70, %cst_26 {dimension_numbers = #tpu.dot_dimension_numbers<[1], [0], [0], [1], [0, 0, 1, 1], [], []>} : vector<16x32xf32>, vector<32x32xf32>, vector<16x32xf32> -> vector<16x32xf32>
    %c0_27 = arith.constant 0 : index
    %c0_28 = arith.constant 0 : index
    %72 = vector.load %arg17[%c0_27, %c0_28] : memref<32x32xf32, #tpu.memory_space<vmem>>, vector<32x32xf32>
    %cst_29 = arith.constant dense<0.000000e+00> : vector<16x32xf32>
    %73 = tpu.matmul %37, %72, %cst_29 {dimension_numbers = #tpu.dot_dimension_numbers<[1], [0], [0], [1], [0, 0, 1, 1], [], []>} : vector<16x32xf32>, vector<32x32xf32>, vector<16x32xf32> -> vector<16x32xf32>
    %74 = arith.addf %71, %73 : vector<16x32xf32>
    %c0_30 = arith.constant 0 : index
    %c0_31 = arith.constant 0 : index
    %75 = vector.load %arg18[%c0_30, %c0_31] : memref<32x32xf32, #tpu.memory_space<vmem>>, vector<32x32xf32>
    %cst_32 = arith.constant dense<0.000000e+00> : vector<16x32xf32>
    %76 = tpu.matmul %69, %75, %cst_32 {dimension_numbers = #tpu.dot_dimension_numbers<[1], [0], [0], [1], [0, 0, 1, 1], [], []>} : vector<16x32xf32>, vector<32x32xf32>, vector<16x32xf32> -> vector<16x32xf32>
    %77 = arith.addf %74, %76 : vector<16x32xf32>
    %c0_33 = arith.constant 0 : index
    %c0_34 = arith.constant 0 : index
    %78 = vector.load %arg19[%c0_33, %c0_34] : memref<1x32xf32, #tpu.memory_space<vmem>>, vector<1x32xf32>
    %79 = vector.broadcast %78 : vector<1x32xf32> to vector<16x32xf32>
    %80 = arith.addf %77, %79 : vector<16x32xf32>
    %81 = arith.negf %80 : vector<16x32xf32>
    %82 = math.exp %81 : vector<16x32xf32>
    %cst_35 = arith.constant 1.000000e+00 : f32
    %83 = vector.broadcast %cst_35 : f32 to vector<16x32xf32>
    %84 = arith.addf %83, %82 : vector<16x32xf32>
    %85 = arith.divf %83, %84 : vector<16x32xf32>
    %86 = arith.mulf %80, %85 : vector<16x32xf32>
    %c0_36 = arith.constant 0 : index
    %c0_37 = arith.constant 0 : index
    %87 = vector.load %arg20[%c0_36, %c0_37] : memref<32x8xf32, #tpu.memory_space<vmem>>, vector<32x8xf32>
    %cst_38 = arith.constant dense<0.000000e+00> : vector<16x8xf32>
    %88 = tpu.matmul %86, %87, %cst_38 {dimension_numbers = #tpu.dot_dimension_numbers<[1], [0], [0], [1], [0, 0, 1, 1], [], []>} : vector<16x32xf32>, vector<32x8xf32>, vector<16x8xf32> -> vector<16x8xf32>
    %c0_39 = arith.constant 0 : index
    %c0_40 = arith.constant 0 : index
    %89 = vector.load %arg21[%c0_39, %c0_40] : memref<1x8xf32, #tpu.memory_space<vmem>>, vector<1x8xf32>
    %90 = vector.broadcast %89 : vector<1x8xf32> to vector<16x8xf32>
    %91 = arith.addf %88, %90 : vector<16x8xf32>
    %c0_41 = arith.constant 0 : index
    %c0_42 = arith.constant 0 : index
    %c0_43 = arith.constant 0 : index
    %92 = vector.load %arg22[%c0_41, %c0_42, %c0_43] : memref<1x16x8xf32, #tpu.memory_space<vmem>>, vector<1x16x8xf32>
    %93 = vector.shape_cast %92 : vector<1x16x8xf32> to vector<16x8xf32>
    %94 = vector.shape_cast %91 : vector<16x8xf32> to vector<1x16x8xf32>
    tpu.vector_store %arg22[%c0_41, %c0_42, %c0_43], %94 {strides = array<i32>} : memref<1x16x8xf32, #tpu.memory_space<vmem>>, vector<1x16x8xf32>,
    return
  }
  func.func @transform_0(%arg0: i32, %arg1: i32) -> (i32, i32) {
    %c0_i32 = arith.constant 0 : i32
    %c0_i32_0 = arith.constant 0 : i32
    return %arg0, %c0_i32 : i32, i32
  }
  func.func @transform_1(%arg0: i32, %arg1: i32) -> (i32, i32, i32) {
    %c0_i32 = arith.constant 0 : i32
    %c0_i32_0 = arith.constant 0 : i32
    return %arg1, %arg0, %c0_i32 : i32, i32, i32
  }
  func.func @transform_2(%arg0: i32, %arg1: i32) -> (i32, i32) {
    %c0_i32 = arith.constant 0 : i32
    %c0_i32_0 = arith.constant 0 : i32
    %c0_i32_1 = arith.constant 0 : i32
    return %c0_i32, %c0_i32_0 : i32, i32
  }
  func.func @transform_3(%arg0: i32, %arg1: i32) -> (i32, i32) {
    %c0_i32 = arith.constant 0 : i32
    %c0_i32_0 = arith.constant 0 : i32
    %c0_i32_1 = arith.constant 0 : i32
    return %c0_i32, %c0_i32_0 : i32, i32
  }
  func.func @transform_4(%arg0: i32, %arg1: i32) -> (i32, i32) {
    %c0_i32 = arith.constant 0 : i32
    %c0_i32_0 = arith.constant 0 : i32
    %c0_i32_1 = arith.constant 0 : i32
    return %c0_i32, %c0_i32_0 : i32, i32
  }
  func.func @transform_5(%arg0: i32, %arg1: i32) -> (i32, i32) {
    %c0_i32 = arith.constant 0 : i32
    %c0_i32_0 = arith.constant 0 : i32
    %c0_i32_1 = arith.constant 0 : i32
    return %c0_i32, %c0_i32_0 : i32, i32
  }
  func.func @transform_6(%arg0: i32, %arg1: i32) -> (i32, i32) {
    %c0_i32 = arith.constant 0 : i32
    %c0_i32_0 = arith.constant 0 : i32
    %c0_i32_1 = arith.constant 0 : i32
    return %c0_i32, %c0_i32_0 : i32, i32
  }
  func.func @transform_7(%arg0: i32, %arg1: i32) -> (i32, i32) {
    %c0_i32 = arith.constant 0 : i32
    %c0_i32_0 = arith.constant 0 : i32
    %c0_i32_1 = arith.constant 0 : i32
    return %c0_i32, %c0_i32_0 : i32, i32
  }
  func.func @transform_8(%arg0: i32, %arg1: i32) -> (i32, i32) {
    %c0_i32 = arith.constant 0 : i32
    %c0_i32_0 = arith.constant 0 : i32
    %c0_i32_1 = arith.constant 0 : i32
    return %c0_i32, %c0_i32_0 : i32, i32
  }
  func.func @transform_9(%arg0: i32, %arg1: i32) -> (i32, i32) {
    %c0_i32 = arith.constant 0 : i32
    %c0_i32_0 = arith.constant 0 : i32
    %c0_i32_1 = arith.constant 0 : i32
    return %c0_i32, %c0_i32_0 : i32, i32
  }
  func.func @transform_10(%arg0: i32, %arg1: i32) -> (i32, i32) {
    %c0_i32 = arith.constant 0 : i32
    %c0_i32_0 = arith.constant 0 : i32
    %c0_i32_1 = arith.constant 0 : i32
    return %c0_i32, %c0_i32_0 : i32, i32
  }
  func.func @transform_11(%arg0: i32, %arg1: i32) -> (i32, i32) {
    %c0_i32 = arith.constant 0 : i32
    %c0_i32_0 = arith.constant 0 : i32
    %c0_i32_1 = arith.constant 0 : i32
    return %c0_i32, %c0_i32_0 : i32, i32
  }
  func.func @transform_12(%arg0: i32, %arg1: i32) -> (i32, i32) {
    %c0_i32 = arith.constant 0 : i32
    %c0_i32_0 = arith.constant 0 : i32
    %c0_i32_1 = arith.constant 0 : i32
    return %c0_i32, %c0_i32_0 : i32, i32
  }
  func.func @transform_13(%arg0: i32, %arg1: i32) -> (i32, i32) {
    %c0_i32 = arith.constant 0 : i32
    %c0_i32_0 = arith.constant 0 : i32
    %c0_i32_1 = arith.constant 0 : i32
    return %c0_i32, %c0_i32_0 : i32, i32
  }
  func.func @transform_14(%arg0: i32, %arg1: i32) -> (i32, i32) {
    %c0_i32 = arith.constant 0 : i32
    %c0_i32_0 = arith.constant 0 : i32
    %c0_i32_1 = arith.constant 0 : i32
    return %c0_i32, %c0_i32_0 : i32, i32
  }
  func.func @transform_15(%arg0: i32, %arg1: i32) -> (i32, i32) {
    %c0_i32 = arith.constant 0 : i32
    %c0_i32_0 = arith.constant 0 : i32
    %c0_i32_1 = arith.constant 0 : i32
    return %c0_i32, %c0_i32_0 : i32, i32
  }
  func.func @transform_16(%arg0: i32, %arg1: i32) -> (i32, i32) {
    %c0_i32 = arith.constant 0 : i32
    %c0_i32_0 = arith.constant 0 : i32
    %c0_i32_1 = arith.constant 0 : i32
    return %c0_i32, %c0_i32_0 : i32, i32
  }
  func.func @transform_17(%arg0: i32, %arg1: i32) -> (i32, i32) {
    %c0_i32 = arith.constant 0 : i32
    %c0_i32_0 = arith.constant 0 : i32
    %c0_i32_1 = arith.constant 0 : i32
    return %c0_i32, %c0_i32_0 : i32, i32
  }
  func.func @transform_18(%arg0: i32, %arg1: i32) -> (i32, i32) {
    %c0_i32 = arith.constant 0 : i32
    %c0_i32_0 = arith.constant 0 : i32
    %c0_i32_1 = arith.constant 0 : i32
    return %c0_i32, %c0_i32_0 : i32, i32
  }
  func.func @transform_19(%arg0: i32, %arg1: i32) -> (i32, i32) {
    %c0_i32 = arith.constant 0 : i32
    %c0_i32_0 = arith.constant 0 : i32
    %c0_i32_1 = arith.constant 0 : i32
    return %c0_i32, %c0_i32_0 : i32, i32
  }
  func.func @transform_20(%arg0: i32, %arg1: i32) -> (i32, i32, i32) {
    %c0_i32 = arith.constant 0 : i32
    %c0_i32_0 = arith.constant 0 : i32
    return %arg1, %arg0, %c0_i32 : i32, i32, i32
  }
}

</mosaic_0001>

<bundles_post_ra>
// kernel: tpu_custom_call.1
= control target key start
LH: loop header
LB: loop body
LE: loop exit
PB: predicated region body
PF: predicated region fallthrough
CT: control target
= control target key end

     0   :  { %s3025_s0 = inlined_call_operand.vmem [shape: f32[32,6], index: 0, kind: input, shape index: {}]   ;;  %s3026_s1 = inlined_call_operand.vmem [shape: f32[2,32,6], index: 1, kind: input, shape index: {}]   ;;  %s3027_s2 = inlined_call_operand.hbm [shape: f32[6,32], index: 2, kind: input, shape index: {}]   ;;  %s3028_s3 = inlined_call_operand.vmem [shape: f32[1,32], index: 3, kind: input, shape index: {}]   ;;  %s3029_s4 = inlined_call_operand.vmem [shape: f32[32,32], index: 4, kind: input, shape index: {}]   ;;  %s3030_s5 = inlined_call_operand.hbm [shape: f32[1,32], index: 5, kind: input, shape index: {}]   ;;  %s3031_s6 = inlined_call_operand.hbm [shape: f32[3,32], index: 6, kind: input, shape index: {}]   ;;  %s3032_s7 = inlined_call_operand.hbm [shape: f32[1,32], index: 7, kind: input, shape index: {}]   ;;  %s3033_s8 = inlined_call_operand.vmem [shape: f32[32,32], index: 8, kind: input, shape index: {}]   ;;  %s3034_s9 = inlined_call_operand.hbm [shape: f32[1,32], index: 9, kind: input, shape index: {}]   ;;  %s3035_s10 = inlined_call_operand.hbm [shape: f32[3,32], index: 10, kind: input, shape index: {}]   ;;  %s3036_s11 = inlined_call_operand.hbm [shape: f32[1,32], index: 11, kind: input, shape index: {}]   ;;  %s3037_s12 = inlined_call_operand.vmem [shape: f32[32,32], index: 12, kind: input, shape index: {}]   ;;  %s3038_s13 = inlined_call_operand.vmem [shape: f32[1,32], index: 13, kind: input, shape index: {}]   ;;  %s3039_s14 = inlined_call_operand.vmem [shape: f32[32,32], index: 14, kind: input, shape index: {}]   ;;  %s3040_s15 = inlined_call_operand.vmem [shape: f32[32,32], index: 15, kind: input, shape index: {}]   ;;  %s3041_s16 = inlined_call_operand.vmem [shape: f32[32,32], index: 16, kind: input, shape index: {}]   ;;  %s3042_s17 = inlined_call_operand.vmem [shape: f32[1,32], index: 17, kind: input, shape index: {}]   ;;  %s3043_s18 = inlined_call_operand.vmem [shape: f32[32,8], index: 18, kind: input, shape index: {}]   ;;  %s3044_s19 = inlined_call_operand.vmem [shape: f32[1,8], index: 19, kind: input, shape index: {}]   ;;  %s3045_s20 = inlined_call_operand.vmem [shape: f32[2,32,8], index: 20, kind: output, shape index: {}]  }
   0x1   :  { %3054 = sst [smem:[#allocation19_spill]] %s3025_s0 }
   0x2   :  { %3055 = sst [smem:[#allocation20_spill]] %s3026_s1 }
   0x3   :  { %3056 = sst [smem:[#allocation21_spill]] %s3027_s2 }
   0x4   :  { %3057 = sst [smem:[#allocation22_spill]] %s3028_s3 }
   0x5   :  { %3058 = sst [smem:[#allocation23_spill]] %s3029_s4 }
   0x6   :  { %3059 = sst [smem:[#allocation24_spill]] %s3030_s5 }
   0x7   :  { %3060 = sst [smem:[#allocation25_spill]] %s3032_s7 }
   0x8   :  { %3061 = sst [smem:[#allocation26_spill]] %s3035_s10 }
   0x9   :  { %3062 = sst [smem:[#allocation27_spill]] %s3038_s13 }
   0xa   :  { %3063 = sst [smem:[#allocation28_spill]] %s3041_s16 }
   0xb   :  { %3064 = sst [smem:[#allocation29_spill]] %s3042_s17 }
   0xc   :  { %3065 = sst [smem:[#allocation30_spill]] %s3043_s18 }
   0xd   :  { %3066 = sst [smem:[#allocation31_spill]] %s3044_s19 }
   0xe   :  { %25 = vsyncpa [#allocation4], 0 }
   0xf   :  { %26 = vsyncpa [#allocation6], 0 }
  0x10   :  { %27 = vsyncpa [#allocation9], 0 }
  0x11   :  { %28 = vsyncpa [#allocation12], 0  ;;  %s2645_s1 = smov 0   ;;  %s2647_s22 = smov 0  }
  0x12   :  { %s2649_s23 = smov 0   ;;  %s2651_s24 = smov 0  }
  0x13   :  { %s2653_s2 = smov 0  }
  0x14 LB: > { %3067 = sst [smem:[#allocation18_spill]] %s2525_s2  ;;  %s2527_s25 = smov [#allocation5]   ;;  %s2525_s2 = sphi %s2653_s2, %s34_s2   ;;  %s2521_s24 = sphi %s2651_s24, %s3092_s24   ;;  %s2517_s23 = sphi %s2649_s23, %s3091_s23   ;;  %s2513_s22 = sphi %s2647_s22, %s3090_s22   ;;  %s2509_s1 = sphi %s2645_s1, %s3089_s1  }
  0x15   : > { %s541_s3 = sshll.u32 %s2527_s25, 4  ;;  %s1865_s26 = sadd.s32 4294967295, %s2525_s2   ;;  %s542_s3 = int_to_ptr.vmem [resolvable:$true] %s541_s3 }
  0x16   : > { %p1867_p0 = scmp.ge.s32.totalorder %s2525_s2, 1  ;;  %p511_p1 = scmp.lt.s32.totalorder %s2525_s2, 5 }
  0x17   : > { %p2673_p2 = scmp.eq.s32.totalorder %s1865_s26, 0  ;;  %s2528_s4 = smov [#allocation8]  }
  0x18   : > { %p2677_p3 = pnand %p1867_p0, %p511_p1  ;;  %s563_s29 = sshll.u32 %s2528_s4, 4  ;;  %s2683_s29 = int_to_ptr.vmem [resolvable:$true] %s563_s29 }
  0x19   : > { %s3068_s27 = scalar_select %p2673_p2, 1, 0 }
  0x1a   : > { %s3069_s28 = scalar_select %p2677_p3, 1, 0 }
  0x1b   : > { %p2143_p4 = pneg %p2677_p3  ;;  %s2529_s30 = smov [#allocation11]  }
  0x1c   : > { %s588_s0 = sshll.u32 %s2529_s30, 4  ;;  %s3071_s5 = sld [smem:[#allocation24_spill]]  ;;  %s2691_s0 = int_to_ptr.vmem [resolvable:$true] %s588_s0 }
  0x1d   : > { %p2687_p5 = pnand %p2673_p2, %p2143_p4 }
  0x1f   : > { %p2701_p7 = pneg %p2687_p5 }
  0x22   : > { %s2275_s2 = scalar_lea.hbm %s3071_s5, 16 }
  0x23   : > { %p2276_p6 = scmp.ne.s32.totalorder %s3071_s5, %s2275_s2  ;;  %p2282_p10 = scmp.lt.u32.totalorder %s2275_s2, %s3071_s5 }
  0x25   : > { %p2278_p8 = pnand %p2701_p7, %p2276_p6 }
  0x27   : > { %p2279_p9 = pneg %p2278_p8 }
  0x29   : > { %p2284_p11 = pnand %p2282_p10, %p2279_p9 }
  0x2b   : > { %2287 = shalt.err (!%p2284_p11)
}
  0x2c   : > { %s2288_s25 = scalar_lea.vmem %s542_s3, 16  ;;  %s2295_s19 = scalar_lea.vmem %s542_s3, 32 }
  0x2d   : > { %p2289_p12 = scmp.ne.s32.totalorder %s542_s3, %s2288_s25  ;;  %p2296_p1 = scmp.lt.s32.totalorder %s542_s3, %s542_s3 }
  0x2e   : > { %p2297_p4 = scmp.lt.s32.totalorder %s2295_s19, %s2288_s25 }
  0x2f   : > { %p2291_p13 = pnand %p2289_p12, %p2701_p7 }
  0x30   : > { %p2298_p2 = por %p2297_p4, %p2296_p1 }
  0x31   : > { %p2292_p0 = pneg %p2291_p13 }
  0x33   : > { %p2299_p3 = pnand %p2298_p2, %p2292_p0 }
  0x35   : > { %2302 = shalt.err (!%p2299_p3)
}
  0x36   : > { %2149 = dma.hbm_to_vmem [thread:$0]  (!%p2687_p5), %s3071_s5, 16, %s542_s3, [#allocation6]  }
  0x37   : > { %s3073_s7 = sld [smem:[#allocation25_spill]] }
  0x3d   : > { %s2303_s30 = scalar_lea.hbm %s3073_s7, 16 }
  0x3e   : > { %p2304_p6 = scmp.ne.s32.totalorder %s3073_s7, %s2303_s30  ;;  %p2310_p2 = scmp.lt.u32.totalorder %s2303_s30, %s3073_s7 }
  0x40   : > { %p2306_p8 = pnand %p2304_p6, %p2701_p7 }
  0x42   : > { %p2307_p9 = pneg %p2306_p8 }
  0x44   : > { %p2312_p3 = pnand %p2310_p2, %p2307_p9 }
  0x46   : > { %2315 = shalt.err (!%p2312_p3)
}
  0x47   : > { %s2316_s3 = scalar_lea.vmem %s2683_s29, 16  ;;  %s2323_s13 = scalar_lea.vmem %s2683_s29, 32 }
  0x48   : > { %p2317_p10 = scmp.ne.s32.totalorder %s2683_s29, %s2316_s3  ;;  %p2324_p13 = scmp.lt.s32.totalorder %s2683_s29, %s2683_s29 }
  0x49   : > { %p2325_p0 = scmp.lt.s32.totalorder %s2323_s13, %s2316_s3 }
  0x4a   : > { %p2319_p11 = pnand %p2317_p10, %p2701_p7 }
  0x4b   : > { %p2326_p1 = por %p2325_p0, %p2324_p13 }
  0x4c   : > { %p2320_p12 = pneg %p2319_p11 }
  0x4e   : > { %p2327_p4 = pnand %p2326_p1, %p2320_p12 }
  0x50   : > { %2330 = shalt.err (!%p2327_p4)
}
  0x51   : > { %2155 = dma.hbm_to_vmem [thread:$0]  (!%p2687_p5), %s3073_s7, 16, %s2683_s29, [#allocation9]  }
  0x52   : > { %s3074_s10 = sld [smem:[#allocation26_spill]] }
  0x58   : > { %s2331_s2 = scalar_lea.hbm %s3074_s10, 64 }
  0x59   : > { %p2332_p6 = scmp.ne.s32.totalorder %s3074_s10, %s2331_s2  ;;  %p2338_p2 = scmp.lt.u32.totalorder %s2331_s2, %s3074_s10 }
  0x5b   : > { %p2334_p8 = pnand %p2332_p6, %p2701_p7 }
  0x5d   : > { %p2335_p9 = pneg %p2334_p8 }
  0x5f   : > { %p2340_p3 = pnand %p2338_p2, %p2335_p9 }
  0x61   : > { %2343 = shalt.err (!%p2340_p3)
}
  0x62   : > { %s2344_s29 = scalar_lea.vmem %s2691_s0, 64  ;;  %p2352_p13 = scmp.lt.s32.totalorder %s2691_s0, %s2691_s0 }
  0x63   : > { %p2345_p10 = scmp.ne.s32.totalorder %s2691_s0, %s2344_s29  ;;  %p2353_p0 = scmp.lt.s32.totalorder %s2344_s29, %s2344_s29 }
  0x65   : > { %p2347_p11 = pnand %p2345_p10, %p2701_p7  ;;  %p2354_p1 = por %p2353_p0, %p2352_p13 }
  0x67   : > { %p2348_p12 = pneg %p2347_p11 }
  0x69   : > { %p2355_p4 = pnand %p2354_p1, %p2348_p12 }
  0x6b   : > { %2358 = shalt.err (!%p2355_p4)
}
  0x6c   : > { %2161 = dma.hbm_to_vmem [thread:$0]  (!%p2687_p5), %s3074_s10, 64, %s2691_s0, [#allocation12]  }
  0x6d   : > { %s43_s26 = sadd.s32 1, %s2517_s23  ;;  %s46_s4 = sadd.s32 1, %s2521_s24 }
  0x6e   : > { %p44_p6 = scmp.ge.s32.totalorder %s43_s26, 2  ;;  %s2530_s18 = smov [#allocation3]  }
  0x6f   : > { %s524_s2 = sshll.u32 %s2530_s18, 4  ;;  %s2531_s30 = smov [#allocation7]   ;;  %s525_s2 = int_to_ptr.vmem [resolvable:$true] %s524_s2 }
  0x70   : > { %s3094_s26 = smov (%p44_p6, %s43_s26), 0  ;;  %s3096_s4 = smov (!%p44_p6, %s46_s4), %s2521_s24 }
  0x71   : > { %s552_s25 = sshll.u32 %s2531_s30, 4  ;;  %s3075_s29 = sld [smem:[#allocation21_spill]]  ;;  %s2769_s25 = int_to_ptr.vmem [resolvable:$true] %s552_s25 }
  0x77   : > { %s2359_s13 = scalar_lea.hbm %s3075_s29, 128 }
  0x78   : > { %p2360_p9 = scmp.ne.s32.totalorder %s3075_s29, %s2359_s13  ;;  %p2366_p10 = scmp.lt.u32.totalorder %s2359_s13, %s3075_s29 }
  0x7a   : > { %p2362_p2 = pnand %p2360_p9, %p2701_p7 }
  0x7c   : > { %p2363_p3 = pneg %p2362_p2 }
  0x7e   : > { %p2368_p11 = pnand %p2366_p10, %p2363_p3 }
  0x80   : > { %2371 = shalt.err (!%p2368_p11)
}
  0x81   : > { %s2372_s30 = scalar_lea.vmem %s525_s2, 128  ;;  %p2380_p1 = scmp.lt.s32.totalorder %s525_s2, %s525_s2 }
  0x82   : > { %p2373_p12 = scmp.ne.s32.totalorder %s525_s2, %s2372_s30  ;;  %p2381_p4 = scmp.lt.s32.totalorder %s2372_s30, %s2372_s30 }
  0x84   : > { %p2375_p13 = pnand %p2373_p12, %p2701_p7  ;;  %p2382_p6 = por %p2381_p4, %p2380_p1 }
  0x86   : > { %p2376_p0 = pneg %p2375_p13 }
  0x88   : > { %p2383_p8 = pnand %p2382_p6, %p2376_p0 }
  0x8a   : > { %2386 = shalt.err (!%p2383_p8)
}
  0x8b   : > { %2146 = dma.hbm_to_vmem [thread:$0]  (!%p2687_p5), %s3075_s29, 128, %s525_s2, [#allocation4]  }
  0x8c   : > { %p3076_p9 = scmp.ge.s32.totalorder %s3096_s4, 2  ;;  %s2387_s16 = scalar_lea.hbm %s3031_s6, 64 }
  0x8d   : > { %p2388_p2 = scmp.ne.s32.totalorder %s3031_s6, %s2387_s16  ;;  %p2394_p10 = scmp.lt.u32.totalorder %s2387_s16, %s3031_s6 }
  0x8e   : > { %s3098_s4 = smov (%p3076_p9, %s3096_s4), 0 }
  0x8f   : > { %p2390_p8 = pnand %p2388_p2, %p2701_p7 }
  0x91   : > { %p2391_p3 = pneg %p2390_p8 }
  0x93   : > { %p2396_p11 = pnand %p2394_p10, %p2391_p3 }
  0x95   : > { %2399 = shalt.err (!%p2396_p11)
}
  0x96   : > { %s2400_s2 = scalar_lea.vmem %s2769_s25, 64  ;;  %p2408_p1 = scmp.lt.s32.totalorder %s2769_s25, %s2769_s25 }
  0x97   : > { %p2401_p12 = scmp.ne.s32.totalorder %s2769_s25, %s2400_s2  ;;  %p2409_p4 = scmp.lt.s32.totalorder %s2400_s2, %s2400_s2 }
  0x99   : > { %p2403_p13 = pnand %p2401_p12, %p2701_p7  ;;  %p2410_p6 = por %p2409_p4, %p2408_p1 }
  0x9b   : > { %p2404_p0 = pneg %p2403_p13 }
  0x9d   : > { %p2411_p9 = pnand %p2410_p6, %p2404_p0 }
  0x9f   : > { %2414 = shalt.err (!%p2411_p9)
}
  0xa0   : > { %2152 = dma.hbm_to_vmem [thread:$0]  (!%p2687_p5), %s3031_s6, 64, %s2769_s25, [#allocation6]  }
  0xa1   : > { %s2532_s3 = smov [#allocation10]   ;;  %s2533_s13 = smov [#allocation13]  }
  0xa2   : > { %s577_s5 = sshll.u32 %s2532_s3, 4  ;;  %s599_s16 = sshll.u32 %s2533_s13, 4  ;;  %s578_s5 = int_to_ptr.vmem [resolvable:$true] %s577_s5  ;;  %s2815_s16 = int_to_ptr.vmem [resolvable:$true] %s599_s16 }
  0xa3   : > { %s2415_s30 = scalar_lea.hbm %s3034_s9, 16 }
  0xa4   : > { %p2416_p2 = scmp.ne.s32.totalorder %s3034_s9, %s2415_s30  ;;  %p2422_p10 = scmp.lt.u32.totalorder %s2415_s30, %s3034_s9 }
  0xa6   : > { %p2418_p8 = pnand %p2416_p2, %p2701_p7 }
  0xa8   : > { %p2419_p3 = pneg %p2418_p8 }
  0xaa   : > { %p2424_p11 = pnand %p2422_p10, %p2419_p3 }
  0xac   : > { %2427 = shalt.err (!%p2424_p11)
}
  0xad   : > { %s2428_s19 = scalar_lea.vmem %s578_s5, 16  ;;  %s2435_s3 = scalar_lea.vmem %s578_s5, 32 }
  0xae   : > { %p2429_p12 = scmp.ne.s32.totalorder %s578_s5, %s2428_s19  ;;  %p2436_p1 = scmp.lt.s32.totalorder %s578_s5, %s578_s5 }
  0xaf   : > { %p2437_p4 = scmp.lt.s32.totalorder %s2435_s3, %s2428_s19 }
  0xb0   : > { %p2431_p13 = pnand %p2429_p12, %p2701_p7 }
  0xb1   : > { %p2438_p6 = por %p2437_p4, %p2436_p1 }
  0xb2   : > { %p2432_p0 = pneg %p2431_p13 }
  0xb4   : > { %p2439_p9 = pnand %p2438_p6, %p2432_p0 }
  0xb6   : > { %2442 = shalt.err (!%p2439_p9)
}
  0xb7   : > { %2158 = dma.hbm_to_vmem [thread:$0]  (!%p2687_p5), %s3034_s9, 16, %s578_s5, [#allocation9]  }
  0xb8   : > { %s2443_s30 = scalar_lea.hbm %s3036_s11, 16 }
  0xb9   : > { %p2444_p2 = scmp.ne.s32.totalorder %s3036_s11, %s2443_s30  ;;  %p2450_p10 = scmp.lt.u32.totalorder %s2443_s30, %s3036_s11 }
  0xbb   : > { %p2446_p8 = pnand %p2444_p2, %p2701_p7 }
  0xbd   : > { %p2447_p3 = pneg %p2446_p8 }
  0xbf   : > { %p2452_p11 = pnand %p2450_p10, %p2447_p3 }
  0xc1   : > { %2455 = shalt.err (!%p2452_p11)
}
  0xc2   : > { %s2456_s5 = scalar_lea.vmem %s2815_s16, 16  ;;  %s2463_s3 = scalar_lea.vmem %s2815_s16, 32 }
  0xc3   : > { %p2457_p12 = scmp.ne.s32.totalorder %s2815_s16, %s2456_s5  ;;  %p2464_p1 = scmp.lt.s32.totalorder %s2815_s16, %s2815_s16 }
  0xc4   : > { %p2465_p4 = scmp.lt.s32.totalorder %s2463_s3, %s2456_s5 }
  0xc5   : > { %p2459_p13 = pnand %p2457_p12, %p2701_p7 }
  0xc6   : > { %p2466_p6 = por %p2465_p4, %p2464_p1 }
  0xc7   : > { %p2460_p0 = pneg %p2459_p13 }
  0xc9   : > { %p2467_p9 = pnand %p2466_p6, %p2460_p0 }
  0xcb   : > { %2470 = shalt.err (!%p2467_p9)
}
  0xcc   : > { %2164 = dma.hbm_to_vmem [thread:$0]  (!%p2687_p5), %s3036_s11, 16, %s2815_s16, [#allocation12]  }
  0xcd   : > { %p3077_p2 = scmp.ne.s32.totalorder %s3069_s28, 0 }
  0xce   : > { %p3078_p7 = scmp.ne.s32.totalorder (!%p3077_p2), %s3068_s27, 0 }
  0xcf   : > { %658 = sbr.rel (%p3077_p2) target bundleno = 1561 (0x619), region = 100 }
  0xd6   : > { %2492 = dma.done.wait (%p3078_p7), [#allocation4], 128  }
  0xd7   : > { %2494 = vsyncadd (%p3078_p7), [#allocation4], 4294967168 }
  0xd8   : > { %2496 = dma.done.wait (%p3078_p7), [#allocation6], 80  }
  0xd9   : > { %2498 = vsyncadd (%p3078_p7), [#allocation6], 4294967216 }
  0xda   : > { %2500 = dma.done.wait (%p3078_p7), [#allocation9], 32  }
  0xdb   : > { %2502 = vsyncadd (%p3078_p7), [#allocation9], 4294967264 }
  0xdc   : > { %2504 = dma.done.wait (%p3078_p7), [#allocation12], 80  }
  0xdd   : > { %2506 = vsyncadd (%p3078_p7), [#allocation12], 4294967216  ;;  %s1884_s17 = sshll.u32 %s2513_s22, 1  ;;  %p760_p5 = scmp.lt.s32.totalorder %s2509_s1, 1 }
  0xde   : > { %p754_p8 = scmp.lt.s32.totalorder %s1884_s17, 3  ;;  %s3079_s2 = sld [smem:[#allocation19_spill]] }
  0xdf   : > { %s761_s28 = scalar_select %p760_p5, %s2509_s1, 1 }
  0xe0   : > { %s3100_s17 = smov (!%p754_p8, %s1884_s17), 3  ;;  %s3080_s27 = sld [smem:[#allocation20_spill]] }
  0xe1   : > { %s1887_s21 = sshll.u32 %s761_s28, 2  ;;  %s1885_s16 = sshll.u32 %s3100_s17, 3 }
  0xe2   : > { %s765_s0 = sadd.s32 %s1887_s21, %s3100_s17  ;;  %p1892_p3 = scmp.ne.s32.totalorder %s2509_s1, 0 }
  0xe3   : > { %s1888_s25 = sshll.u32 %s765_s0, 3  ;;  %v785_v0 = vld [vmem:[#allocation3] sm:$0x3f] (!%p1892_p3)  ;;  %vm800_vm0 = vcmask (!%p1892_p3), 1045504   ;;  %vm793_vm1 = vcmask (!%p1892_p3), 48128   ;;  %s3081_s21 = sld [smem:[#allocation23_spill]] (!%p1892_p3) }
  0xe4   : > { %s757_s7 = scalar_lea.vmem %s3079_s2, %s1885_s16  ;;  %s2891_s22 = scalar_lea.vmem %s3045_s20, %s1888_s25  ;;  %1973 = vmatprep.subr.msk.mxu0 (!%p1892_p3), %vm800_vm0, %v785_v0  ;;  %vm904_vm2 = vcmask (!%p1892_p3), 261120   ;;  %v1899_v24 = vld [vmem:[#allocation5] ss:$0 sm:$0xff] (!%p1892_p3) }
  0xe5   : > { %782 = sbr.rel (%p1892_p3) target bundleno = 691 (0x2b3), region = 132  ;;  %v783_v1 = vld [vmem:[%s757_s7] sm:$0xff] (!%p1892_p3)  ;;  %v784_v2 = vld [vmem:[%s757_s7 + $0x8] sm:$0xff] (!%p1892_p3)  ;;  %1974 = vmatpush3.msk.msra.mxu0 (!%p1892_p3), %vm800_vm0, %v785_v0  ;;  %s3082_s19 = sld [smem:[#allocation22_spill]] (!%p1892_p3) }
  0xe6   : > { %s2886_s3 = scalar_lea.vmem %s3080_s27, %s1888_s25  ;;  %1975 = vmatprep.mubr.msk.f32.mxu0 (!%p1892_p3), %vm793_vm1, %v783_v1 }
  0xe7   : > { %1976 = vmatmul.mubr.msk.f32.vlgmr.msra.gmra.mrb[0].mxu0 (!%p1892_p3), %vm793_vm1, %v784_v2 }
  0xe9   : > { %v893_v3 = vld [vmem:[%s3081_s21] sm:$0xff] (!%p1892_p3)  ;;  %v894_v4 = vld [vmem:[%s3081_s21 + $0x8] sm:$0xff] (!%p1892_p3)  ;;  %v895_v6 = vld [vmem:[%s3081_s21 + $0x10] sm:$0xff] (!%p1892_p3) }
  0xea   : > { %v2055_v5 = vpack.c.bf16 (!%p1892_p3), %v894_v4, %v893_v3  ;;  %v896_v7 = vld [vmem:[%s3081_s21 + $0x18] sm:$0xff] (!%p1892_p3) }
  0xeb   : > { %v2059_v8 = vpack.c.bf16 (!%p1892_p3), %v896_v7, %v895_v6  ;;  %v1893_v9 = vld [vmem:[%s3082_s19] ss:$0 sm:$0xff] (!%p1892_p3) }
  0xec   : > { %2056 = vmatprep.subr.bf16.mxu1 %v2055_v5 }
  0xed   : > { %2058 = vmatpush3.bf16.msra.mxu1 %v2055_v5 }
  0xee   : > { %2060 = vmatprep.subr.bf16.mxu1 %v2059_v8 }
  0xf1   : > { %2062 = vmatpush3.bf16.msra.mxu1 %v2059_v8 }
 0x1ba   : > { %v1977_v10 = vpop.f32.mrb[0].mxu0 }
 0x1bb   : > { %v876_v11 = vadd.f32 %v1977_v10, %v1893_v9  ;;  %v870_v12 = vpop.f32.mrb[1].mxu0 }
 0x1bc   : > { %v871_v13 = vadd.f32 %v1893_v9, %v870_v12 }
 0x1bd   : > { %v1898_v14 = vmul.f32 -1.442695, %v876_v11 }
 0x1be   : > { %v1897_v15 = vmul.f32 -1.442695, %v871_v13 }
 0x1bf   : > { %2232 = vpow2.f32 %v1898_v14 }
 0x1c0   : > { %2234 = vpow2.f32 %v1897_v15 }
 0x1c9   : > { %v2233_v16 = vpop.eup %2232 }
 0x1ca   : > { %v2235_v17 = vpop.eup %2234  ;;  %v886_v18 = vadd.f32 1.0, %v2233_v16 }
 0x1cb   : > { %v885_v19 = vadd.f32 1.0, %v2235_v17 }
 0x1cc   : > { %2236 = vrcp.f32 %v886_v18 }
 0x1cd   : > { %2238 = vrcp.f32 %v885_v19 }
 0x1d6   : > { %v2237_v20 = vpop.eup %2236 }
 0x1d7   : > { %v2239_v21 = vpop.eup %2238  ;;  %v892_v23 = vmul.f32 %v2237_v20, %v876_v11 }
 0x1d8   : > { %v891_v22 = vmul.f32 %v2239_v21, %v871_v13 }
 0x1da   : > { %1986 = vmatprep.mubr.msk.f32.mxu1 %vm904_vm2, %v891_v22 }
 0x1db   : > { %1987 = vmatmul.mubr.msk.f32.vlgmr.msra.gmra.mrb[0].mxu1 %vm904_vm2, %v892_v23 }
 0x2ae   : > { %v1988_v25 = vpop.f32.mrb[0].mxu1 }
 0x2af   : > { %v983_v26 = vadd.f32 %v1988_v25, %v1899_v24  ;;  %v977_v27 = vpop.f32.mrb[1].mxu1 }
 0x2b0   : > { %v978_v28 = vadd.f32 %v1899_v24, %v977_v27 }
 0x2b1   : > { %987 = vst.msk [vmem:[#allocation2 + $0x8] sm:$0xff] %vm904_vm2, %v983_v26 }
 0x2b2   : > { %986 = vst.msk [vmem:[#allocation2] sm:$0xff] %vm904_vm2, %v978_v28 }
 0x2b3 PF: > { %v991_v29 = vld [vmem:[%s2886_s3 + $0x8] sm:$0xff]  ;;  %v990_v30 = vld [vmem:[%s2886_s3] sm:$0xff]  ;;  %v2534_v31 = vmov 0   ;;  %v2535_v32 = vmov 1   ;;  %v2536_v33 = vmov 2   ;;  %v2537_v34 = vmov 3  }
 0x2b4   : > { %2242 = vset.pattern.permute.xlu1 %v2534_v31  ;;  %2240 = vset.pattern.permute.xlu0 %v2534_v31  ;;  %v2538_v35 = vmov 4   ;;  %v2539_v36 = vmov 5   ;;  %v1064_v37 = vld [vmem:[%s3033_s8] sm:$0xff]  ;;  %v1065_v38 = vld [vmem:[%s3033_s8 + $0x8] sm:$0xff]  ;;  %v1066_v40 = vld [vmem:[%s3033_s8 + $0x10] sm:$0xff]  ;;  %v1003_v49 = vlaneseq  ;;  %vm1075_vm3 = vcmask 261120  }
 0x2b5   : > { %1000 = vperm.xlu1 %2242, %v991_v29   ;;  %995 = vperm.xlu0 %2240, %v990_v30   ;;  %v2063_v39 = vpack.c.bf16 %v1065_v38, %v1064_v37  ;;  %v1067_v41 = vld [vmem:[%s3033_s8 + $0x18] sm:$0xff]  ;;  %v1227_v43 = vld [vmem:[%s3037_s12] sm:$0xff]  ;;  %v1228_v44 = vld [vmem:[%s3037_s12 + $0x8] sm:$0xff]  ;;  %s3083_s3 = sld [smem:[#allocation28_spill]]  ;;  %s3084_s30 = sld [smem:[#allocation27_spill]]  ;;  %vm1691_vm4 = vcmask 64512  }
 0x2b6   : > { %v2067_v42 = vpack.c.bf16 %v1067_v41, %v1066_v40  ;;  %v2929_v45 = vpack.c.bf16 %v1228_v44, %v1227_v43  ;;  %v1323_v46 = vld [vmem:[%s3040_s15] sm:$0xff]  ;;  %v1324_v47 = vld [vmem:[%s3040_s15 + $0x8] sm:$0xff]  ;;  %v1004_v50 = vshrl.u32 %v1003_v49, 7  ;;  %v992_v55 = vld [vmem:[#allocation7] sm:$0x7]  ;;  %s3085_s25 = sld [smem:[#allocation30_spill]] }
 0x2b7   : > { %2064 = vmatprep.subr.bf16.mxu1 %v2063_v39  ;;  %v2079_v48 = vpack.c.bf16 %v1324_v47, %v1323_v46  ;;  %v1902_v8 = vld [vmem:[#allocation8] ss:$0 sm:$0xff]  ;;  %v1157_v17 = vld [vmem:[#allocation11] sm:$0x7]  ;;  %v1229_v46 = vld [vmem:[%s3037_s12 + $0x10] sm:$0xff]  ;;  %s3086_s0 = sld [smem:[#allocation29_spill]] }
 0x2b8   : > { %2066 = vmatpush3.bf16.msra.mxu1 %v2063_v39  ;;  %v1019_v51 = vsub.s32 1, %v1004_v50  ;;  %v1005_v54 = vsub.s32 0, %v1004_v50  ;;  %v1035_v57 = vsub.s32 2, %v1004_v50  ;;  %v1230_v47 = vld [vmem:[%s3037_s12 + $0x18] sm:$0xff] }
 0x2b9   : > { %2243 = vset.pattern.permute.xlu1 %v2535_v32  ;;  %2241 = vset.pattern.permute.xlu0 %v2535_v32 }
 0x2ba   : > { %1014 = vperm.xlu1 %2243, %v991_v29   ;;  %1010 = vperm.xlu0 %2241, %v990_v30   ;;  %v1020_v56 = vrot.slane %v992_v55, %v1019_v51  ;;  %v1006_v58 = vrot.slane %v992_v55, %v1005_v54  ;;  %v1036_v0 = vrot.slane %v992_v55, %v1035_v57 }
 0x2bb   : > { %2068 = vmatprep.subr.bf16.mxu1 %v2067_v42  ;;  %2080 = vmatprep.subr.bf16.mxu0 %v2079_v48  ;;  %v1169_v19 = vrot.slane %v1157_v17, %v1005_v54  ;;  %v1199_v20 = vrot.slane %v1157_v17, %v1035_v57  ;;  %v1183_v21 = vrot.slane %v1157_v17, %v1019_v51  ;;  %v1911_v17 = vld [vmem:[%s3084_s30] ss:$0 sm:$0xff]  ;;  %s3087_s30 = sld [smem:[#allocation31_spill]] }
 0x2bc   : > { %2070 = vmatpush3.bf16.msra.mxu1 %v2067_v42  ;;  %2082 = vmatpush3.bf16.msra.mxu0 %v2079_v48 }
 0x2bd   : > { %2072 = vmatprep.subr.bf16.mxu1 %v2929_v45 }
 0x2be   : > { %2244 = vset.pattern.permute.xlu1 %v2536_v33  ;;  %2245 = vset.pattern.permute.xlu0 %v2536_v33 }
 0x2bf   : > { %1026 = vperm.xlu1 %2244, %v990_v30   ;;  %1030 = vperm.xlu0 %2245, %v991_v29  }
 0x2c3   : > { %2246 = vset.pattern.permute.xlu1 %v2537_v34  ;;  %2248 = vset.pattern.permute.xlu0 %v2537_v34 }
 0x2c4   : > { %1159 = vperm.xlu1 %2246, %v990_v30   ;;  %1163 = vperm.xlu0 %2248, %v991_v29  }
 0x2c8   : > { %2247 = vset.pattern.permute.xlu1 %v2538_v35  ;;  %2250 = vset.pattern.permute.xlu0 %v2539_v36 }
 0x2c9   : > { %1173 = vperm.xlu1 %2247, %v990_v30   ;;  %1193 = vperm.xlu0 %2250, %v991_v29  }
 0x2cd   : > { %1177 = vperm.xlu1 %2247, %v991_v29  }
 0x2d1   : > { %2249 = vset.pattern.permute.xlu1 %v2539_v36 }
 0x2d2   : > { %1189 = vperm.xlu1 %2249, %v990_v30   ;;  %v1908_v30 = vld [vmem:[#allocation13] ss:$0 sm:$0xff] }
 0x334   : > { %v1001_v52 = vpop.permute.xlu1 %1000  ;;  %v996_v53 = vpop.permute.xlu0 %995 }
 0x335   : > { %v1007_v61 = vmul.f32 %v1006_v58, %v996_v53  ;;  %v1008_v1 = vmul.f32 %v1006_v58, %v1001_v52  ;;  %v2075_v52 = vpack.c.bf16 %v1230_v47, %v1229_v46 }
 0x339   : > { %v1015_v59 = vpop.permute.xlu1 %1014  ;;  %v1011_v60 = vpop.permute.xlu0 %1010 }
 0x33a   : > { %v1022_v62 = vmul.f32 %v1020_v56, %v1015_v59  ;;  %v1021_v63 = vmul.f32 %v1020_v56, %v1011_v60  ;;  %v1325_v60 = vld [vmem:[%s3040_s15 + $0x10] sm:$0xff] }
 0x33c   : > { %v1024_v4 = vadd.f32 %v1022_v62, %v1008_v1  ;;  %v1023_v5 = vadd.f32 %v1021_v63, %v1007_v61  ;;  %v1319_v62 = vld [vmem:[%s3039_s14] sm:$0xff]  ;;  %v1320_v63 = vld [vmem:[%s3039_s14 + $0x8] sm:$0xff] }
 0x33d   : > { %v1905_v1 = vld [vmem:[#allocation10] ss:$0 sm:$0xff] }
 0x33e   : > { %v1027_v2 = vpop.permute.xlu1 %1026  ;;  %v1031_v3 = vpop.permute.xlu0 %1030 }
 0x33f   : > { %v1037_v6 = vmul.f32 %v1036_v0, %v1027_v2  ;;  %v1038_v7 = vmul.f32 %v1036_v0, %v1031_v3  ;;  %v2087_v0 = vpack.c.bf16 %v1320_v63, %v1319_v62  ;;  %v1321_v3 = vld [vmem:[%s3039_s14 + $0x10] sm:$0xff] }
 0x341   : > { %v1039_v9 = vadd.f32 %v1037_v6, %v1023_v5  ;;  %v1040_v10 = vadd.f32 %v1038_v7, %v1024_v4  ;;  %v1322_v4 = vld [vmem:[%s3039_s14 + $0x18] sm:$0xff] }
 0x343   : > { %v1049_v11 = vadd.f32 %v1902_v8, %v1040_v10  ;;  %v1160_v12 = vpop.permute.xlu1 %1159  ;;  %v1048_v13 = vadd.f32 %v1902_v8, %v1039_v9  ;;  %v1164_v14 = vpop.permute.xlu0 %1163  ;;  %v2091_v8 = vpack.c.bf16 %v1322_v4, %v1321_v3  ;;  %v988_v9 = vld [vmem:[#allocation2] sm:$0xff] }
 0x344   : > { %v1171_v23 = vmul.f32 %v1169_v19, %v1164_v14  ;;  %v1170_v29 = vmul.f32 %v1169_v19, %v1160_v12  ;;  %v1489_v10 = vld [vmem:[%s3083_s3] sm:$0xff]  ;;  %v1492_v14 = vld [vmem:[%s3083_s3 + $0x18] sm:$0xff] }
 0x345   : > { %v1904_v15 = vmul.f32 -1.442695, %v1049_v11  ;;  %v1903_v16 = vmul.f32 -1.442695, %v1048_v13 }
 0x347   : > { %2251 = vpow2.f32 %v1904_v15  ;;  %v989_v15 = vld [vmem:[#allocation2 + $0x8] sm:$0xff] }
 0x348   : > { %v1174_v18 = vpop.permute.xlu1 %1173  ;;  %2253 = vpow2.f32 %v1903_v16  ;;  %v1194_v22 = vpop.permute.xlu0 %1193 }
 0x349   : > { %v1201_v26 = vmul.f32 %v1199_v20, %v1194_v22  ;;  %v1184_v27 = vmul.f32 %v1183_v21, %v1174_v18  ;;  %v1599_v22 = vld [vmem:[%s3085_s25] sm:$0xff] }
 0x34b   : > { %v1186_v36 = vadd.f32 %v1184_v27, %v1170_v29 }
 0x34c   : > { %v1178_v24 = vpop.permute.xlu1 %1177 }
 0x34d   : > { %v1185_v25 = vmul.f32 %v1183_v21, %v1178_v24 }
 0x34f   : > { %v1187_v28 = vadd.f32 %v1185_v25, %v1171_v23  ;;  %v1600_v23 = vld [vmem:[%s3085_s25 + $0x8] sm:$0xff]  ;;  %v1601_v25 = vld [vmem:[%s3085_s25 + $0x10] sm:$0xff] }
 0x350   : > { %v2103_v24 = vpack.c.bf16 %v1600_v23, %v1599_v22 }
 0x351   : > { %v2252_v31 = vpop.eup %2251  ;;  %v1203_v32 = vadd.f32 %v1201_v26, %v1187_v28  ;;  %v1190_v33 = vpop.permute.xlu1 %1189  ;;  %v1602_v26 = vld [vmem:[%s3085_s25 + $0x18] sm:$0xff]  ;;  %v1920_v28 = vld [vmem:[%s3086_s0] ss:$0 sm:$0xff] }
 0x352   : > { %v2254_v34 = vpop.eup %2253  ;;  %v1057_v35 = vadd.f32 1.0, %v2252_v31  ;;  %v1200_v37 = vmul.f32 %v1199_v20, %v1190_v33  ;;  %v2107_v27 = vpack.c.bf16 %v1602_v26, %v1601_v25 }
 0x353   : > { %v1212_v38 = vadd.f32 %v1908_v30, %v1203_v32  ;;  %v1056_v39 = vadd.f32 1.0, %v2254_v34 }
 0x354   : > { %2255 = vrcp.f32 %v1057_v35  ;;  %v1202_v40 = vadd.f32 %v1200_v37, %v1186_v36 }
 0x355   : > { %v1910_v41 = vmul.f32 -1.442695, %v1212_v38  ;;  %2257 = vrcp.f32 %v1056_v39 }
 0x356   : > { %v1211_v42 = vadd.f32 %v1908_v30, %v1202_v40 }
 0x357   : > { %2259 = vpow2.f32 %v1910_v41 }
 0x358   : > { %v1909_v43 = vmul.f32 -1.442695, %v1211_v42 }
 0x35a   : > { %2261 = vpow2.f32 %v1909_v43  ;;  %v1923_v43 = vld [vmem:[%s3087_s30] ss:$0 sm:$0xff] }
 0x35e   : > { %v2256_v44 = vpop.eup %2255 }
 0x35f   : > { %v2258_v48 = vpop.eup %2257  ;;  %v1063_v49 = vmul.f32 %v2256_v44, %v1049_v11  ;;  %v1490_v11 = vld [vmem:[%s3083_s3 + $0x8] sm:$0xff] }
 0x360   : > { %v1062_v50 = vmul.f32 %v2258_v48, %v1048_v13  ;;  %v2095_v12 = vpack.c.bf16 %v1490_v11, %v1489_v10  ;;  %v1491_v13 = vld [vmem:[%s3083_s3 + $0x10] sm:$0xff] }
 0x361   : > { %v2260_v51 = vpop.eup %2259  ;;  %v2099_v16 = vpack.c.bf16 %v1492_v14, %v1491_v13 }
 0x362   : > { %v1220_v53 = vadd.f32 1.0, %v2260_v51  ;;  %1997 = vmatprep.mubr.msk.f32.mxu1 %vm1075_vm3, %v1062_v50 }
 0x363   : > { %1998 = vmatmul.mubr.msk.f32.vlgmr.msra.gmra.mrb[0].mxu1 %vm1075_vm3, %v1063_v49 }
 0x364   : > { %v2262_v54 = vpop.eup %2261  ;;  %2074 = vmatpush3.bf16.msra.mxu1 %v2929_v45  ;;  %2263 = vrcp.f32 %v1220_v53  ;;  %v1326_v45 = vld [vmem:[%s3040_s15 + $0x18] sm:$0xff] }
 0x365   : > { %v1219_v55 = vadd.f32 1.0, %v2262_v54  ;;  %2076 = vmatprep.subr.bf16.mxu1 %v2075_v52  ;;  %v2083_v61 = vpack.c.bf16 %v1326_v45, %v1325_v60 }
 0x367   : > { %2265 = vrcp.f32 %v1219_v55  ;;  %2084 = vmatprep.subr.bf16.mxu0 %v2083_v61 }
 0x368   : > { %2078 = vmatpush3.bf16.msra.mxu1 %v2075_v52  ;;  %2086 = vmatpush3.bf16.msra.mxu0 %v2083_v61 }
 0x369   : > { %2088 = vmatprep.subr.bf16.mxu0 %v2087_v0  ;;  %2104 = vmatprep.subr.bf16.mxu1 %v2103_v24 }
 0x36e   : > { %v2264_v56 = vpop.eup %2263 }
 0x36f   : > { %v1226_v59 = vmul.f32 %v2264_v56, %v1212_v38 }
 0x371   : > { %v2266_v57 = vpop.eup %2265 }
 0x372   : > { %v1225_v58 = vmul.f32 %v2266_v57, %v1211_v42 }
 0x374   : > { %2008 = vmatprep.mubr.msk.f32.mxu1 %vm1075_vm3, %v1225_v58 }
 0x375   : > { %2009 = vmatmul.mubr.msk.f32.vlgmr.msra.gmra.mrb[2].mxu1 %vm1075_vm3, %v1226_v59 }
 0x376   : > { %2106 = vmatpush3.bf16.msra.mxu1 %v2103_v24 }
 0x377   : > { %2108 = vmatprep.subr.bf16.mxu1 %v2107_v27 }
 0x37a   : > { %2110 = vmatpush3.bf16.msra.mxu1 %v2107_v27 }
 0x436   : > { %v1999_v2 = vpop.f32.mrb[0].mxu1 }
 0x437   : > { %v1148_v5 = vpop.f32.mrb[1].mxu1  ;;  %v1154_v7 = vadd.f32 %v1999_v2, %v1905_v1 }
 0x438   : > { %v1149_v6 = vadd.f32 %v1905_v1, %v1148_v5 }
 0x43a   : > { %2019 = vmatprep.mubr.msk.f32.mxu0 %vm1075_vm3, %v1149_v6 }
 0x43b   : > { %2020 = vmatmul.mubr.msk.f32.vlgmr.msra.gmra.mrb[0].mxu0 %vm1075_vm3, %v1154_v7 }
 0x43c   : > { %2090 = vmatpush3.bf16.msra.mxu0 %v2087_v0  ;;  %2030 = vmatprep.mubr.msk.f32.mxu0 %vm1075_vm3, %v988_v9 }
 0x43d   : > { %2092 = vmatprep.subr.bf16.mxu0 %v2091_v8 }
 0x440   : > { %2094 = vmatpush3.bf16.msra.mxu0 %v2091_v8 }
 0x441   : > { %2096 = vmatprep.subr.bf16.mxu0 %v2095_v12 }
 0x443   : > { %2031 = vmatmul.mubr.msk.f32.vlgmr.msra.gmra.mrb[0].mxu0 %vm1075_vm3, %v989_v15 }
 0x444   : > { %2098 = vmatpush3.bf16.msra.mxu0 %v2095_v12 }
 0x445   : > { %2100 = vmatprep.subr.bf16.mxu0 %v2099_v16 }
 0x448   : > { %v2010_v18 = vpop.f32.mrb[2].mxu1  ;;  %2102 = vmatpush3.bf16.msra.mxu0 %v2099_v16 }
 0x449   : > { %v1310_v19 = vpop.f32.mrb[3].mxu1  ;;  %v1316_v21 = vadd.f32 %v2010_v18, %v1911_v17 }
 0x44a   : > { %v1311_v20 = vadd.f32 %v1911_v17, %v1310_v19 }
 0x44c   : > { %2041 = vmatprep.mubr.msk.f32.mxu0 %vm1075_vm3, %v1311_v20 }
 0x44d   : > { %2042 = vmatmul.mubr.msk.f32.vlgmr.msra.gmra.mrb[0].mxu0 %vm1075_vm3, %v1316_v21 }
 0x520   : > { %v2043_v29 = vpop.f32.mrb[0].mxu0 }
 0x521   : > { %v1584_v30 = vadd.f32 %v2043_v29, %v1920_v28  ;;  %v1565_v31 = vpop.f32.mrb[1].mxu0 }
 0x522   : > { %v1583_v32 = vadd.f32 %v1920_v28, %v1565_v31 }
 0x523   : > { %v1922_v33 = vmul.f32 -1.442695, %v1584_v30 }
 0x524   : > { %v1921_v34 = vmul.f32 -1.442695, %v1583_v32 }
 0x525   : > { %2267 = vpow2.f32 %v1922_v33 }
 0x526   : > { %2269 = vpow2.f32 %v1921_v34 }
 0x52f   : > { %v2268_v35 = vpop.eup %2267 }
 0x530   : > { %v2270_v36 = vpop.eup %2269  ;;  %v1592_v37 = vadd.f32 1.0, %v2268_v35 }
 0x531   : > { %v1591_v38 = vadd.f32 1.0, %v2270_v36 }
 0x532   : > { %2271 = vrcp.f32 %v1592_v37 }
 0x533   : > { %2273 = vrcp.f32 %v1591_v38 }
 0x53c   : > { %v2272_v39 = vpop.eup %2271 }
 0x53d   : > { %v2274_v40 = vpop.eup %2273  ;;  %v1598_v42 = vmul.f32 %v2272_v39, %v1584_v30 }
 0x53e   : > { %v1597_v41 = vmul.f32 %v2274_v40, %v1583_v32 }
 0x540   : > { %2052 = vmatprep.mubr.msk.f32.mxu1 %vm1075_vm3, %v1597_v41 }
 0x541   : > { %2053 = vmatmul.mubr.msk.f32.vlgmr.msra.gmra.mrb[4].mxu1 %vm1075_vm3, %v1598_v42 }
 0x614   : > { %v2054_v44 = vpop.f32.mrb[4].mxu1 }
 0x615   : > { %v1688_v46 = vadd.f32 %v2054_v44, %v1923_v43  ;;  %v1682_v47 = vpop.f32.mrb[5].mxu1 }
 0x616   : > { %v1683_v48 = vadd.f32 %v1923_v43, %v1682_v47 }
 0x617   : > { %1693 = vst.msk [vmem:[%s2891_s22 + $0x8] sm:$0xff] %vm1691_vm4, %v1688_v46 }
 0x618   : > { %1692 = vst.msk [vmem:[%s2891_s22] sm:$0xff] %vm1691_vm4, %v1683_v48 }
 0x619 PF: > { %s3088_s2 = sld [smem:[#allocation18_spill]]  ;;  %s3089_s1 = smov %s2517_s23 }
 0x61a   : > { %s3090_s22 = smov %s2521_s24  ;;  %s3091_s23 = smov %s3094_s26 }
 0x61b   : > { %s3092_s24 = smov %s3098_s4 }
 0x61f   : > { %s34_s2 = sadd.s32 1, %s3088_s2  }
 0x620   : > { %p31_p10 = scmp.ge.s32.totalorder %s34_s2, 6  }
 0x622   :  { %33 = sbr.rel (!%p31_p10) target bundleno = 20 (0x14), region = 166 }
 0x629   :  { %1724 = vsyncpa [#allocation4], 1 }
 0x62a   :  { %1726 = vsyncpa [#allocation4 + $0x1], 1 }
 0x62b   :  { %1727 = vsyncpa [#allocation6], 1 }
 0x62c   :  { %1728 = vsyncpa [#allocation9], 1 }
 0x62d   :  { %1729 = vsyncpa [#allocation12], 1 }

</bundles_post_ra>
